<compile_context>
chip_gen: v7x
topology: tpu7x:2x2x1
jax: 0.10.0
libtpu: 0.0.40
codegen_flags: <defaults>
</compile_context>

<pallas_src>
import functools

import jax
import jax.numpy as jnp
from jax.experimental import pallas as pl
from jax.experimental.pallas import tpu as pltpu


def _round_up(v: int, m: int) -> int:
    return ((v + m - 1) // m) * m


def _readout_kernel(seg_ref, x_ref, out_ref, acc_ref, cnt_ref, *,
                    op: str, n_total: int, need_row_mask: bool):
    """Grid = (D tiles ["parallel"], node tiles ["arbitrary", reduction last]).

    seg_ref : sum/mean -> (1, tile_n) i32 lane-dense graph id per node
              max/min  -> (tile_n, 1) i32 sublane graph id per node
              (padded nodes carry the sentinel id g_pad -> match no graph)
    x_ref   : (tile_n, tile_d) node-feature tile (unpadded stream; the ragged
              last node tile may contain garbage rows)
    out_ref : (g_pad, tile_d) — written once, at the last node tile
    acc_ref : (g_pad, tile_d) f32 VMEM scratch — resident accumulator
    cnt_ref : (g_pad, 1)      f32 VMEM scratch — per-graph node counts (mean)
    """
    i = pl.program_id(1)                 # node-tile (reduction) axis — last
    n_node_tiles = pl.num_programs(1)
    g_pad = acc_ref.shape[0]
    tile_n = x_ref.shape[0]

    @pl.when(i == 0)
    def _init():
        if op in ("sum", "mean"):
            acc_ref[...] = jnp.zeros(acc_ref.shape, acc_ref.dtype)
            if op == "mean":
                cnt_ref[...] = jnp.zeros(cnt_ref.shape, cnt_ref.dtype)
        else:
            fill = -jnp.inf if op == "max" else jnp.inf
            acc_ref[...] = jnp.full(acc_ref.shape, fill, acc_ref.dtype)

    xv = x_ref[...]                      # (tile_n, tile_d)
    seg = seg_ref[...]

    if op in ("sum", "mean"):
        # Lane-dense one-hot (g_pad, tile_n); sentinel-padded seg lanes are all-zero.
        g_iota = jax.lax.broadcasted_iota(jnp.int32, (g_pad, tile_n), 0)
        one_hot = seg == g_iota                               # (g_pad, tile_n) bool
        if need_row_mask:
            # Ragged last node tile: zero garbage x rows explicitly — garbage
            # may be NaN, and NaN * 0 (from the one-hot) would poison the dot.
            valid = n_total - i * tile_n
            row_iota = jax.lax.broadcasted_iota(jnp.int32, (tile_n, 1), 0)
            xv = jnp.where(row_iota < valid, xv, jnp.zeros_like(xv))
        prec = (jax.lax.Precision.HIGHEST if xv.dtype == jnp.float32
                else jax.lax.Precision.DEFAULT)               # bf16 inputs: fast path
        acc_ref[...] += jax.lax.dot_general(
            one_hot.astype(xv.dtype), xv,
            dimension_numbers=(((1,), (0,)), ((), ())),       # -> (g_pad, tile_d)
            preferred_element_type=jnp.float32,
            precision=prec)
        if op == "mean":
            # Counts fall out of the one-hot that is already built each tile.
            cnt_ref[...] += jnp.sum(one_hot.astype(jnp.float32), axis=1,
                                    keepdims=True)            # (g_pad, 1)
    else:
        # max / min: one masked sublane reduce per graph, single combine.
        fill = -jnp.inf if op == "max" else jnp.inf
        xf = xv.astype(jnp.float32)
        # Garbage rows of a ragged tile carry the sentinel seg id -> never
        # selected; the where() select cannot propagate NaN garbage.
        # TODO(synk): for num_graphs in the hundreds, switch to scalar-prefetched
        # contiguous per-graph node offsets instead of this small unrolled loop.
        rows = []
        for g in range(g_pad):
            masked = jnp.where(seg == g, xf, fill)            # (tile_n, tile_d)
            if op == "max":
                rows.append(jnp.max(masked, axis=0, keepdims=True))
            else:
                rows.append(jnp.min(masked, axis=0, keepdims=True))
        stacked = jnp.concatenate(rows, axis=0)               # (g_pad, tile_d)
        if op == "max":
            acc_ref[...] = jnp.maximum(acc_ref[...], stacked)
        else:
            acc_ref[...] = jnp.minimum(acc_ref[...], stacked)

    @pl.when(i == n_node_tiles - 1)
    def _finalize():
        res = acc_ref[...]                                    # (g_pad, tile_d) f32
        if op == "mean":
            res = res * pl.reciprocal(jnp.maximum(cnt_ref[...], 1.0), approx=False)
        if op in ("max", "min"):
            fill = -jnp.inf if op == "max" else jnp.inf
            # DGL readout_nodes returns 0 for empty graphs; padded graph rows
            # also land here (a real graph whose every value is +/-inf would be
            # mis-zeroed — pathological edge case).
            res = jnp.where(res == fill, jnp.zeros_like(res), res)
        out_ref[...] = res.astype(out_ref.dtype)              # single lane-dense store


def basic_readout(x: jax.Array, seg_ids: jax.Array, num_graphs: int,
                  op: str = "sum", *, tile_n: int = 1024, tile_d: int = 512):
    """Pallas implementation of BasicReadout.forward(g, x).

    x        : (N, D) node features
    seg_ids  : (N,)   int32 graph index per node (0 .. num_graphs-1)
    returns  : (num_graphs, D)
    """
    if op not in ("sum", "mean", "max", "min"):
        raise ValueError(f"unsupported readout op: {op}")

    n, d = x.shape
    g_pad = _round_up(max(num_graphs, 1), 8)                  # sublane-aligned

    # --- node-axis tiling (x is NOT padded; only seg ids are) ---
    if n <= tile_n:
        tile_n_eff = n                                        # full dim: always legal
    else:
        tile_n_eff = max(128, (tile_n // 128) * 128)          # lane-dense seg blocks
    n_node_tiles = -(-n // tile_n_eff)
    need_row_mask = (n % tile_n_eff) != 0
    seg_len = n_node_tiles * tile_n_eff

    # --- feature-axis tiling ---
    if d <= tile_d:
        if d >= 256:
            # >=2 blocks on the parallel D axis so both v7x TensorCores get work.
            tile_d_eff = _round_up(-(-d // 2), 128)
        else:
            tile_d_eff = d                                    # full dim
    else:
        tile_d_eff = max(128, (tile_d // 128) * 128)
    n_d_tiles = -(-d // tile_d_eff)

    # Graph id per node; padded nodes get the sentinel g_pad (matches no graph).
    seg_flat = jnp.full((seg_len,), g_pad, jnp.int32).at[:n].set(
        seg_ids.astype(jnp.int32))
    if op in ("sum", "mean"):
        seg_arr = seg_flat.reshape(1, seg_len)                            # lane-dense
        seg_spec = pl.BlockSpec((1, tile_n_eff), lambda j, i: (0, i))
    else:
        seg_arr = seg_flat.reshape(seg_len, 1)                            # sublane
        seg_spec = pl.BlockSpec((tile_n_eff, 1), lambda j, i: (i, 0))

    kernel = functools.partial(_readout_kernel, op=op, n_total=n,
                               need_row_mask=need_row_mask)

    out = pl.pallas_call(
        kernel,
        out_shape=jax.ShapeDtypeStruct((g_pad, d), x.dtype),
        grid_spec=pltpu.PrefetchScalarGridSpec(
            num_scalar_prefetch=0,
            grid=(n_d_tiles, n_node_tiles),                   # (parallel, reduction)
            in_specs=[
                seg_spec,
                pl.BlockSpec((tile_n_eff, tile_d_eff), lambda j, i: (i, j)),
            ],
            # Same output block across the node axis -> resident; written once.
            out_specs=pl.BlockSpec((g_pad, tile_d_eff), lambda j, i: (0, j)),
            scratch_shapes=[
                pltpu.VMEM((g_pad, tile_d_eff), jnp.float32),  # accumulator
                pltpu.VMEM((g_pad, 1), jnp.float32),           # counts (mean only)
            ],
        ),
        compiler_params=pltpu.CompilerParams(
            # D-tile axis parallel (megacore / v7x 2 TCs); node (reduction) axis last.
            dimension_semantics=("parallel", "arbitrary"),
        ),
    )(seg_arr, x)

    return out[:num_graphs, :]


def _reference_readout(x, seg_ids, num_graphs, op):
    """Pure-JAX reference (mirrors dgl.readout_nodes semantics)."""
    if op == "sum":
        return jax.ops.segment_sum(x, seg_ids, num_segments=num_graphs)
    if op == "mean":
        s = jax.ops.segment_sum(x, seg_ids, num_segments=num_graphs)
        c = jax.ops.segment_sum(jnp.ones((x.shape[0], 1), x.dtype), seg_ids,
                                num_segments=num_graphs)
        return s / jnp.maximum(c, 1.0)
    if op == "max":
        return jax.ops.segment_max(x, seg_ids, num_segments=num_graphs)
    if op == "min":
        return jax.ops.segment_min(x, seg_ids, num_segments=num_graphs)
    raise ValueError(op)


if __name__ == "__main__":
    ok = True

    # Case 1: small batched graph (4 graphs, 32 nodes, D=128) -> single-tile path.
    key = jax.random.PRNGKey(0)
    num_graphs = 4
    node_counts = jnp.array([10, 6, 9, 7], dtype=jnp.int32)
    n_total = int(node_counts.sum())          # 32 nodes
    d = 128
    seg_ids = jnp.repeat(jnp.arange(num_graphs, dtype=jnp.int32), node_counts,
                         total_repeat_length=n_total)
    x = jax.random.normal(key, (n_total, d), dtype=jnp.float32)

    for op in ("sum", "mean", "max", "min"):
        out = jax.block_until_ready(basic_readout(x, seg_ids, num_graphs, op=op))
        ref = _reference_readout(x, seg_ids, num_graphs, op)
        atol, rtol = (2e-2, 1e-3) if op in ("sum", "mean") else (1e-5, 1e-5)
        if not jnp.allclose(out, ref, atol=atol, rtol=rtol):
            ok = False
            err = float(jnp.max(jnp.abs(out - ref)))
            print(f"MISMATCH case1 op={op}: max_abs_err={err}")

    # Case 2: multi-tile path (2 node tiles with a ragged last tile, 2 D tiles).
    key2 = jax.random.PRNGKey(1)
    num_graphs2 = 3
    node_counts2 = jnp.array([70, 60, 70], dtype=jnp.int32)
    n2 = int(node_counts2.sum())              # 200 nodes (not tile-aligned)
    d2 = 256
    seg_ids2 = jnp.repeat(jnp.arange(num_graphs2, dtype=jnp.int32), node_counts2,
                          total_repeat_length=n2)
    x2 = jax.random.normal(key2, (n2, d2), dtype=jnp.float32)

    for op in ("sum", "mean", "max", "min"):
        out = jax.block_until_ready(
            basic_readout(x2, seg_ids2, num_graphs2, op=op, tile_n=128, tile_d=128))
        ref = _reference_readout(x2, seg_ids2, num_graphs2, op)
        atol, rtol = (2e-2, 1e-3) if op in ("sum", "mean") else (1e-5, 1e-5)
        if not jnp.allclose(out, ref, atol=atol, rtol=rtol):
            ok = False
            err = float(jnp.max(jnp.abs(out - ref)))
            print(f"MISMATCH case2 op={op}: max_abs_err={err}")

    if ok:
        print("KERNEL_OK")
</pallas_src>

<mosaic_0001>
module attributes {stable_mosaic.version = 11 : i64} {
  func.func @_readout_kernel(%arg0: i32, %arg1: i32, %arg2: memref<1x32xi32, #tpu.memory_space<vmem>>, %arg3: memref<32x128xf32, #tpu.memory_space<vmem>>, %arg4: memref<8x128xf32, #tpu.memory_space<vmem>>, %arg5: memref<8x128xf32, #tpu.memory_space<vmem>>, %arg6: memref<8x1xf32, #tpu.memory_space<vmem>>) attributes {dimension_semantics = [#tpu.dimension_semantics<parallel>, #tpu.dimension_semantics<arbitrary>], iteration_bounds = array<i64: 1, 1>, scalar_prefetch = 0 : i64, scratch_operands = 2 : i64, tpu.core_type = #tpu.core_type<tc>, window_params = [{transform_indices = @transform_0, window_bounds = array<i64: 1, 32>}, {transform_indices = @transform_1, window_bounds = array<i64: 32, 128>}, {transform_indices = @transform_2, window_bounds = array<i64: 8, 128>}]} {
    %c0_i32 = arith.constant 0 : i32
    %0 = arith.cmpi eq, %arg1, %c0_i32 : i32
    %1 = arith.extui %0 : i1 to i32
    %c0_i32_0 = arith.constant 0 : i32
    %2 = arith.cmpi ne, %1, %c0_i32_0 : i32
    scf.if %2 {
      %cst_10 = arith.constant 0.000000e+00 : f32
      %17 = vector.broadcast %cst_10 : f32 to vector<8x128xf32>
      %c0_11 = arith.constant 0 : index
      %c0_12 = arith.constant 0 : index
      %18 = vector.load %arg5[%c0_11, %c0_12] : memref<8x128xf32, #tpu.memory_space<vmem>>, vector<8x128xf32>
      tpu.vector_store %arg5[%c0_11, %c0_12], %17 {strides = array<i32>} : memref<8x128xf32, #tpu.memory_space<vmem>>, vector<8x128xf32>,
    } else {
    }
    %c0 = arith.constant 0 : index
    %c0_1 = arith.constant 0 : index
    %3 = vector.load %arg3[%c0, %c0_1] : memref<32x128xf32, #tpu.memory_space<vmem>>, vector<32x128xf32>
    %c0_2 = arith.constant 0 : index
    %c0_3 = arith.constant 0 : index
    %4 = vector.load %arg2[%c0_2, %c0_3] : memref<1x32xi32, #tpu.memory_space<vmem>>, vector<1x32xi32>
    %5 = tpu.iota {dimensions = array<i32: 0>} : vector<8x32xi32>
    %6 = vector.broadcast %4 : vector<1x32xi32> to vector<8x32xi32>
    %7 = arith.cmpi eq, %6, %5 : vector<8x32xi32>
    %c0_4 = arith.constant 0 : index
    %c0_5 = arith.constant 0 : index
    %8 = vector.load %arg5[%c0_4, %c0_5] : memref<8x128xf32, #tpu.memory_space<vmem>>, vector<8x128xf32>
    %9 = arith.extui %7 : vector<8x32xi1> to vector<8x32xi32>
    %10 = arith.sitofp %9 : vector<8x32xi32> to vector<8x32xf32>
    %cst = arith.constant dense<0.000000e+00> : vector<8x128xf32>
    %11 = tpu.matmul %10, %3, %cst {dimension_numbers = #tpu.dot_dimension_numbers<[1], [0], [0], [1], [0, 0, 1, 1], [], []>, precision = #tpu.contract_precision<fp32>} : vector<8x32xf32>, vector<32x128xf32>, vector<8x128xf32> -> vector<8x128xf32>
    %12 = arith.addf %8, %11 : vector<8x128xf32>
    %c0_6 = arith.constant 0 : index
    %c0_7 = arith.constant 0 : index
    %13 = vector.load %arg5[%c0_6, %c0_7] : memref<8x128xf32, #tpu.memory_space<vmem>>, vector<8x128xf32>
    tpu.vector_store %arg5[%c0_6, %c0_7], %12 {strides = array<i32>} : memref<8x128xf32, #tpu.memory_space<vmem>>, vector<8x128xf32>,
    %c0_i32_8 = arith.constant 0 : i32
    %14 = arith.cmpi eq, %arg1, %c0_i32_8 : i32
    %15 = arith.extui %14 : i1 to i32
    %c0_i32_9 = arith.constant 0 : i32
    %16 = arith.cmpi ne, %15, %c0_i32_9 : i32
    scf.if %16 {
      %c0_10 = arith.constant 0 : index
      %c0_11 = arith.constant 0 : index
      %17 = vector.load %arg5[%c0_10, %c0_11] : memref<8x128xf32, #tpu.memory_space<vmem>>, vector<8x128xf32>
      %c0_12 = arith.constant 0 : index
      %c0_13 = arith.constant 0 : index
      %18 = vector.load %arg4[%c0_12, %c0_13] : memref<8x128xf32, #tpu.memory_space<vmem>>, vector<8x128xf32>
      tpu.vector_store %arg4[%c0_12, %c0_13], %17 {strides = array<i32>} : memref<8x128xf32, #tpu.memory_space<vmem>>, vector<8x128xf32>,
    } else {
    }
    return
  }
  func.func @transform_0(%arg0: i32, %arg1: i32) -> (i32, i32) {
    %c0_i32 = arith.constant 0 : i32
    %c0_i32_0 = arith.constant 0 : i32
    return %c0_i32, %arg1 : i32, i32
  }
  func.func @transform_1(%arg0: i32, %arg1: i32) -> (i32, i32) {
    %c0_i32 = arith.constant 0 : i32
    return %arg1, %arg0 : i32, i32
  }
  func.func @transform_2(%arg0: i32, %arg1: i32) -> (i32, i32) {
    %c0_i32 = arith.constant 0 : i32
    %c0_i32_0 = arith.constant 0 : i32
    return %c0_i32, %arg0 : i32, i32
  }
}

</mosaic_0001>

<bundles_post_ra>
// kernel: tpu_custom_call.1
= control target key start
LH: loop header
LB: loop body
LE: loop exit
PB: predicated region body
PF: predicated region fallthrough
CT: control target
= control target key end

     0   :  { %7 = vsyncpa [#allocation5], 0  ;;  %s891_s0 = inlined_call_operand.hbm [shape: s32[1,32], index: 0, kind: input, shape index: {}]   ;;  %s892_s1 = inlined_call_operand.hbm [shape: f32[32,128], index: 1, kind: input, shape index: {}]   ;;  %s893_s2 = inlined_call_operand.hbm [shape: f32[8,128], index: 2, kind: output, shape index: {}]  }
   0x1   :  { %8 = vsyncpa [#allocation8], 0 }
   0x2   :  { %9 = vsyncpa [#allocation6], 0  ;;  %s796_s9 = smov [#allocation4]   ;;  %s797_s11 = smov [#allocation7]  }
   0x3   :  { %s16_s10 = sshll.u32 %s796_s9, 4  ;;  %s25_s12 = sshll.u32 %s797_s11, 4  ;;  %s17_s10 = int_to_ptr.vmem [resolvable:$true] %s16_s10  ;;  %s819_s12 = int_to_ptr.vmem [resolvable:$true] %s25_s12 }
   0x4   :  { %s724_s15 = scalar_lea.hbm %s891_s0, 16 }
   0x5   :  { %p725_p0 = scmp.ne.s32.totalorder %s891_s0, %s724_s15  ;;  %p728_p1 = scmp.lt.u32.totalorder %s724_s15, %s891_s0 }
   0x7   :  { %p730_p2 = pnand %p728_p1, %p725_p0 }
   0x9   :  { %733 = shalt.err (!%p730_p2)
}
   0xa   :  { %s734_s20 = scalar_lea.vmem %s17_s10, 16  ;;  %s738_s21 = scalar_lea.vmem %s17_s10, 32 }
   0xb   :  { %p735_p3 = scmp.ne.s32.totalorder %s17_s10, %s734_s20  ;;  %p739_p4 = scmp.lt.s32.totalorder %s17_s10, %s17_s10 }
   0xc   :  { %p740_p5 = scmp.lt.s32.totalorder %s738_s21, %s734_s20 }
   0xe   :  { %p741_p6 = por %p740_p5, %p739_p4 }
  0x10   :  { %p742_p7 = pnand %p741_p6, %p735_p3 }
  0x12   :  { %745 = shalt.err (!%p742_p7)
}
  0x13   :  { %19 = dma.hbm_to_vmem [thread:$0]  %s891_s0, 16, %s17_s10, [#allocation5]  }
  0x14   :  { %s746_s26 = scalar_lea.hbm %s892_s1, 512 }
  0x15   :  { %p747_p8 = scmp.ne.s32.totalorder %s892_s1, %s746_s26  ;;  %p750_p9 = scmp.lt.u32.totalorder %s746_s26, %s892_s1 }
  0x17   :  { %p752_p10 = pnand %p750_p9, %p747_p8 }
  0x19   :  { %755 = shalt.err (!%p752_p10)
}
  0x1a   :  { %s756_s3 = scalar_lea.vmem %s819_s12, 512  ;;  %p761_p12 = scmp.lt.s32.totalorder %s819_s12, %s819_s12 }
  0x1b   :  { %p757_p11 = scmp.ne.s32.totalorder %s819_s12, %s756_s3  ;;  %p762_p13 = scmp.lt.s32.totalorder %s756_s3, %s756_s3 }
  0x1d   :  { %p763_p0 = por %p762_p13, %p761_p12 }
  0x1f   :  { %p764_p1 = pnand %p763_p0, %p757_p11 }
  0x21   :  { %767 = shalt.err (!%p764_p1)
}
  0x22   :  { %s798_s0 = smov 128   ;;  %s799_s4 = smov 8  }
  0x23   :  { %31 = dma.hbm_to_vmem [thread:$0]  %s892_s1, 512, %s819_s12, [#allocation8], %s798_s0, %s798_s0, %s799_s4  }
  0x24   :  { %790 = dma.done.wait [#allocation5], 16  }
  0x25   :  { %791 = vsyncadd [#allocation5], 4294967280 }
  0x26   :  { %792 = dma.done.wait [#allocation8], 512  }
  0x27   :  { %793 = vsyncadd [#allocation8], 4294966784  ;;  %v800_v0 = vmov 0.0|0.0   ;;  %v48_v1 = vlaneseq  ;;  %vm801_vm0 = vmmov 0   ;;  %v802_v2 = vmov 0.0   ;;  %v43_v4 = vld [vmem:[#allocation7] sm:$0xff] }
  0x28   :  { %671 = vmatprep.subr.bf16.mxu1 %v800_v0  ;;  %689 = vmatprep.subr.bf16.mxu0 %v800_v0  ;;  %v44_v5 = vld [vmem:[#allocation7 + $0x8] sm:$0xff]  ;;  %v45_v6 = vld [vmem:[#allocation7 + $0x10] sm:$0xff]  ;;  %v63_v7 = vand.u32 4294901760, %v43_v4  ;;  %v46_v9 = vld [vmem:[#allocation7 + $0x18] sm:$0xff]  ;;  %vm58_vm2 = vcmask 261120   ;;  %s803_s1 = smov [#allocation9]  }
  0x29   :  { %613 = vmatprep.mubr.msk.f32.mxu1 %vm801_vm0, %v802_v2  ;;  %646 = vmatprep.mubr.msk.f32.mxu0 %vm801_vm0, %v802_v2  ;;  %v49_v3 = vshrl.u32 %v48_v1, 7  ;;  %v66_v8 = vand.u32 4294901760, %v44_v5  ;;  %v69_v10 = vand.u32 4294901760, %v45_v6  ;;  %v570_v11 = vld [vmem:[#allocation4] ss:$0 sm:$0xff]  ;;  %v72_v12 = vand.u32 4294901760, %v46_v9 }
  0x2a   :  { %v143_v14 = vsub.f32 %v43_v4, %v63_v7  ;;  %s560_s7 = sshll.u32 %s803_s1, 4  ;;  %s561_s7 = int_to_ptr.vmem [resolvable:$true] %s560_s7 }
  0x2b   :  { %vm54_vm1 = vcmp.eq.s32.totalorder %v570_v11, %v49_v3  ;;  %v672_v13 = vpack.c.bf16 %v66_v8, %v63_v7  ;;  %v150_v15 = vsub.f32 %v44_v5, %v66_v8  ;;  %v157_v16 = vsub.f32 %v45_v6, %v69_v10  ;;  %s768_s8 = scalar_lea.vmem %s561_s7, 128  ;;  %p773_p3 = scmp.lt.s32.totalorder %s561_s7, %s561_s7 }
  0x2c   :  { %v675_v17 = vpack.c.bf16 %v72_v12, %v69_v10  ;;  %v164_v18 = vsub.f32 %v46_v9, %v72_v12  ;;  %v571_v19 = vsel %vm54_vm1, 1.0, %v802_v2  ;;  %v144_v21 = vand.u32 4294901760, %v143_v14  ;;  %p769_p2 = scmp.ne.s32.totalorder %s561_s7, %s768_s8  ;;  %p774_p4 = scmp.lt.s32.totalorder %s768_s8, %s768_s8 }
  0x2d   :  { %673 = vmatpush3.bf16.msra.mxu1 %v672_v13  ;;  %691 = vmatpush3.bf16.msra.mxu0 %v672_v13  ;;  %v60_v20 = vsel %vm58_vm2, %v571_v19, 0  ;;  %v151_v22 = vand.u32 4294901760, %v150_v15  ;;  %v158_v23 = vand.u32 4294901760, %v157_v16  ;;  %v684_v41 = vpack.c.bf16 %v150_v15, %v143_v14 }
  0x2e   :  { %674 = vmatprep.subr.bf16.mxu1 %v800_v0  ;;  %692 = vmatprep.subr.bf16.mxu0 %v800_v0  ;;  %v132_v24 = vsub.f32 %v60_v20, %v60_v20  ;;  %v165_v25 = vand.u32 4294901760, %v164_v18  ;;  %v145_v26 = vsub.f32 %v143_v14, %v144_v21  ;;  %v687_v42 = vpack.c.bf16 %v164_v18, %v157_v16  ;;  %p775_p5 = por %p774_p4, %p773_p3 }
  0x2f   :  { %v152_v27 = vsub.f32 %v150_v15, %v151_v22  ;;  %v159_v28 = vsub.f32 %v157_v16, %v158_v23  ;;  %v696_v33 = vpack.c.bf16 %v151_v22, %v144_v21 }
  0x30   :  { %v133_v29 = vand.u32 4294901760, %v132_v24  ;;  %v166_v30 = vsub.f32 %v164_v18, %v165_v25  ;;  %v146_v31 = vand.u32 4294901760, %v145_v26  ;;  %v699_v39 = vpack.c.bf16 %v165_v25, %v158_v23  ;;  %p776_p6 = pnand %p775_p5, %p769_p2 }
  0x31   :  { %676 = vmatpush3.bf16.msra.mxu1 %v675_v17  ;;  %694 = vmatpush3.bf16.msra.mxu0 %v675_v17  ;;  %v153_v32 = vand.u32 4294901760, %v152_v27  ;;  %v160_v36 = vand.u32 4294901760, %v159_v28 }
  0x32   :  { %v134_v34 = vsub.f32 %v132_v24, %v133_v29  ;;  %677 = vmatprep.subr.bf16.mxu1 %v800_v0  ;;  %695 = vmatprep.subr.bf16.mxu0 %v800_v0  ;;  %v167_v37 = vand.u32 4294901760, %v166_v30 }
  0x33   :  { %v678_v35 = vpack.c.bf16 %v153_v32, %v146_v31 }
  0x34   :  { %v135_v38 = vand.u32 4294901760, %v134_v34  ;;  %647 = vmatmul.mubr.f32.vlgmr.msra.gmra.mrb[0].mxu0 %v133_v29  ;;  %v681_v40 = vpack.c.bf16 %v167_v37, %v160_v36 }
  0x35   :  { %697 = vmatpush3.bf16.msra.mxu0 %v696_v33  ;;  %657 = vmatprep.mubr.msk.f32.mxu0 %vm801_vm0, %v802_v2 }
  0x36   :  { %614 = vmatmul.mubr.f32.vlgmr.msra.gmra.mrb[0].mxu1 %v135_v38  ;;  %698 = vmatprep.subr.bf16.mxu0 %v800_v0 }
  0x37   :  { %679 = vmatpush3.bf16.msra.mxu1 %v678_v35  ;;  %624 = vmatprep.mubr.msk.f32.mxu1 %vm801_vm0, %v802_v2 }
  0x38   :  { %680 = vmatprep.subr.bf16.mxu1 %v800_v0 }
  0x39   :  { %700 = vmatpush3.bf16.msra.mxu0 %v699_v39 }
  0x3a   :  { %701 = vmatprep.subr.bf16.mxu0 %v800_v0 }
  0x3b   :  { %682 = vmatpush3.bf16.msra.mxu1 %v681_v40 }
  0x3c   :  { %683 = vmatprep.subr.bf16.mxu1 %v800_v0  ;;  %658 = vmatmul.mubr.msk.f32.vlgmr.msra.gmra.mrb[0].mxu0 %vm58_vm2, %v571_v19 }
  0x3d   :  { %703 = vmatpush3.bf16.msra.mxu0 %v672_v13  ;;  %668 = vmatprep.mubr.msk.f32.mxu0 %vm801_vm0, %v802_v2 }
  0x3e   :  { %625 = vmatmul.mubr.msk.f32.vlgmr.msra.gmra.mrb[0].mxu1 %vm58_vm2, %v571_v19  ;;  %704 = vmatprep.subr.bf16.mxu0 %v800_v0 }
  0x3f   :  { %685 = vmatpush3.bf16.msra.mxu1 %v684_v41  ;;  %635 = vmatprep.mubr.msk.f32.mxu1 %vm801_vm0, %v802_v2 }
  0x40   :  { %686 = vmatprep.subr.bf16.mxu1 %v800_v0 }
  0x41   :  { %706 = vmatpush3.bf16.msra.mxu0 %v675_v17 }
  0x43   :  { %688 = vmatpush3.bf16.msra.mxu1 %v687_v42 }
  0x44   :  { %669 = vmatmul.mubr.msk.f32.vlgmr.msra.gmra.mrb[0].mxu0 %vm58_vm2, %v571_v19 }
  0x46   :  { %636 = vmatmul.mubr.f32.vlgmr.msra.gmra.mrb[0].mxu1 %v132_v24 }
 0x117   :  { %v543_v43 = vpop.f32.mrb[0].mxu0 }
 0x118   :  { %v670_v44 = vpop.f32.mrb[1].mxu0 }
 0x119   :  { %v308_v45 = vpop.f32.mrb[0].mxu1 }
 0x11a   :  { %v707_v46 = vadd.f32 %v543_v43, %v308_v45  ;;  %v637_v47 = vpop.f32.mrb[1].mxu1 }
 0x11c   :  { %553 = vst [vmem:[#allocation9] sm:$0xff] %v707_v46 }
 0x11d   :  { %779 = shalt.err (!%p776_p6)
}
 0x11e   :  { %s780_s11 = scalar_lea.hbm %s893_s2, 128 }
 0x11f   :  { %p781_p7 = scmp.ne.s32.totalorder %s893_s2, %s780_s11  ;;  %p784_p8 = scmp.lt.u32.totalorder %s780_s11, %s893_s2 }
 0x121   :  { %p786_p9 = pnand %p784_p8, %p781_p7 }
 0x123   :  { %789 = shalt.err (!%p786_p9)
}
 0x124   :  { %563 = dma.vmem_to_hbm [thread:$0]  %s561_s7, 128, %s893_s2, [#allocation6]  }
 0x125   :  { %794 = dma.done.wait [#allocation6], 128  }
 0x126   :  { %795 = vsyncadd [#allocation6], 4294967168 }
 0x127   :  { %567 = vsyncpa [#allocation5], 1 }
 0x128   :  { %568 = vsyncpa [#allocation8], 1 }
 0x129   :  { %569 = vsyncpa [#allocation6], 1 }

</bundles_post_ra>
